<compile_context>
chip_gen: v6e
topology: v6e:2x2x1
jax: 0.10.0
libtpu: 0.0.40
codegen_flags: <defaults>
</compile_context>

<pallas_src>
import jax
import jax.numpy as jnp
from jax.experimental import pallas as pl
from jax.experimental.pallas import tpu as pltpu


def bilstm_classifier_kernel(x_ref,      # (T, Bt, E)   time-major embedded tokens (batch tile)
                             w_in_ref,   # (E, 7H)      fused input weights: fwd(i,f,o,g) | bwd(i,o,g)
                             b_in_ref,   # (1, 7H)      fused biases (b_ih + b_hh), same order
                             whh_ref,    # (H, 4H)      fused fwd recurrent weights (i,f,o,g)
                             w_out_ref,  # (2H, Lp)     hidden2label, pre-transposed, lane-padded
                             b_out_ref,  # (1, Lp)      output bias, padded lanes = -1e30
                             out_ref):   # (Bt, Lp)     lane-dense log-prob slab
    T, Bt, E = x_ref.shape
    H = whh_ref.shape[0]
    f32 = jnp.float32

    # Single fused input projection for the whole sequence: all 4 fwd gates + the 3
    # backward gates needed at t=T-1 in one (T*Bt,E)x(E,7H) matmul, bias folded in.
    x2 = x_ref[...].reshape(T * Bt, E)
    gx = (jnp.dot(x2, w_in_ref[...], preferred_element_type=f32)
          + b_in_ref[...]).reshape(T, Bt, 7 * H)

    whh = whh_ref[...]                                   # (H, 4H), gate order (i, f, o | g)

    # Forward recurrence, fully unrolled (T is static & small).
    # TODO(synk): for large T switch to lax.fori_loop carrying (h, c) to bound vreg pressure.
    h = jnp.zeros((Bt, H), f32)
    c = jnp.zeros((Bt, H), f32)
    for t in range(T):
        pre = gx[t, :, 0:4 * H] + jnp.dot(h, whh, preferred_element_type=f32)  # (Bt, 4H)
        sig = jax.nn.sigmoid(pre[:, 0:3 * H])            # one EUP pass covers i, f, o
        i_g = sig[:, 0:H]
        f_g = sig[:, H:2 * H]
        o_g = sig[:, 2 * H:3 * H]
        g_g = jnp.tanh(pre[:, 3 * H:4 * H])
        c = f_g * c + i_g * g_g
        h = o_g * jnp.tanh(c)
    h_fwd = h

    # Backward half of lstm_out[-1] == backward LSTM's very first step on x[T-1] from the
    # zero initial state, so h0 @ W_hh == 0 and f * c0 == 0 exactly -> only i, o, g needed.
    pre_b = gx[T - 1, :, 4 * H:7 * H]                    # (Bt, 3H): columns (i_b, o_b | g_b)
    sig_b = jax.nn.sigmoid(pre_b[:, 0:2 * H])
    i_b = sig_b[:, 0:H]
    o_b = sig_b[:, H:2 * H]
    g_b = jnp.tanh(pre_b[:, 2 * H:3 * H])
    h_bwd = o_b * jnp.tanh(i_b * g_b)

    # Fused output projection: one lane concat (XLU) + one (Bt,2H)x(2H,Lp) matmul, then a
    # numerically-stable log_softmax over the lane-padded label axis (padded lanes carry
    # bias -1e30 -> exp underflows to exactly 0 in f32, so the reduction is unaffected).
    feat = jnp.concatenate([h_fwd, h_bwd], axis=1)       # (Bt, 2H)
    y = jnp.dot(feat, w_out_ref[...], preferred_element_type=f32) + b_out_ref[...]
    m = jnp.max(y, axis=1, keepdims=True)
    z = y - m
    out_ref[...] = z - jnp.log(jnp.sum(jnp.exp(z), axis=1, keepdims=True))


def bilstm_classifier_forward(x, params, label_size, *, batch_tile=256):
    """x: (T, B, E) float32 embedded sequence (time-major). Returns (B, label_size) log-probs."""
    T, B, E = x.shape
    H = params["whh_f"].shape[1]
    L = label_size
    f32 = jnp.float32

    # Hardware-friendly padding: batch -> multiple of 8 sublanes, labels -> 128 lanes so
    # the final store is lane-dense (unmasked vst). Padding is sliced off afterwards.
    Lp = max(128, -(-L // 128) * 128)
    Bt = max(8, -(-min(batch_tile, max(B, 8)) // 8) * 8)    # batch tile (multiple of 8)
    Bp = -(-max(B, 8) // Bt) * Bt                           # padded batch, divisible by Bt
    assert Bp % Bt == 0

    x_p = jnp.zeros((T, Bp, E), f32).at[:, :B, :].set(x)

    # ---- wrapper-side layout plumbing (free): pre-transpose + lane-stack all gates ----
    def gate_blocks(w):   # (4H, E_or_H) -> [(E_or_H, H)] * 4 in PyTorch order i, f, g, o
        return [w[k * H:(k + 1) * H, :].T for k in range(4)]

    def bias_blocks(b):   # (1, 4H) -> [(1, H)] * 4 in PyTorch order i, f, g, o
        return [b[:, k * H:(k + 1) * H] for k in range(4)]

    gi_f, gf_f, gg_f, go_f = gate_blocks(params["wih_f"])
    gi_b, _gf_b, gg_b, go_b = gate_blocks(params["wih_b"])
    bi_f, bf_f, bg_f, bo_f = bias_blocks(params["b_f"])
    bi_b, _bf_b, bg_b, bo_b = bias_blocks(params["b_b"])

    # Fused input weight / bias, column order: fwd (i, f, o, g) | bwd (i, o, g)  -> (E, 7H)
    w_in_fused = jnp.concatenate([gi_f, gf_f, go_f, gg_f, gi_b, go_b, gg_b], axis=1)
    b_in_fused = jnp.concatenate([bi_f, bf_f, bo_f, bg_f, bi_b, bo_b, bg_b], axis=1)

    # Fused forward recurrent weight, column order (i, f, o, g) -> (H, 4H)
    hi, hf, hg, ho = gate_blocks(params["whh_f"])
    whh_fused = jnp.concatenate([hi, hf, ho, hg], axis=1)

    # Fused output projection (2H, Lp); padded label lanes get bias -1e30.
    w_out_fused = jnp.zeros((2 * H, Lp), f32).at[:, :L].set(params["w_out"].T)
    b_out_p = jnp.full((1, Lp), -1e30, f32).at[:, :L].set(params["b_out"])

    grid = (Bp // Bt,)
    in_specs = [
        pl.BlockSpec((T, Bt, E), lambda b: (0, b, 0)),          # x: tiled over batch
        pl.BlockSpec((E, 7 * H), lambda b: (0, 0)),             # weights stay resident
        pl.BlockSpec((1, 7 * H), lambda b: (0, 0)),
        pl.BlockSpec((H, 4 * H), lambda b: (0, 0)),
        pl.BlockSpec((2 * H, Lp), lambda b: (0, 0)),
        pl.BlockSpec((1, Lp), lambda b: (0, 0)),
    ]
    out_specs = pl.BlockSpec((Bt, Lp), lambda b: (b, 0))

    out = pl.pallas_call(
        bilstm_classifier_kernel,
        out_shape=jax.ShapeDtypeStruct((Bp, Lp), f32),
        grid=grid,
        in_specs=in_specs,
        out_specs=out_specs,
        compiler_params=pltpu.CompilerParams(
            dimension_semantics=("parallel",),          # shard batch tiles across TCs (v7x)
            vmem_limit_bytes=32 * 1024 * 1024,          # safe on v5e/v6e/v7x scoped VMEM
        ),
    )(x_p, w_in_fused, b_in_fused, whh_fused, w_out_fused, b_out_p)
    return out[:B, :L]


def reference_forward(x, params):
    """Pure-JAX reference with identical semantics (for correctness check)."""
    T, B, _ = x.shape
    H = params["whh_f"].shape[1]

    def cell(x_t, h, c, wih, whh, b):
        gates = x_t @ wih.T + h @ whh.T + b
        i = jax.nn.sigmoid(gates[:, 0 * H:1 * H])
        f = jax.nn.sigmoid(gates[:, 1 * H:2 * H])
        g = jnp.tanh(gates[:, 2 * H:3 * H])
        o = jax.nn.sigmoid(gates[:, 3 * H:4 * H])
        c_new = f * c + i * g
        return o * jnp.tanh(c_new), c_new

    h = jnp.zeros((B, H), jnp.float32)
    c = jnp.zeros((B, H), jnp.float32)
    for t in range(T):
        h, c = cell(x[t], h, c, params["wih_f"], params["whh_f"], params["b_f"])
    h_bwd, _ = cell(x[T - 1], jnp.zeros((B, H)), jnp.zeros((B, H)),
                    params["wih_b"], params["whh_b"], params["b_b"])
    feat = jnp.concatenate([h, h_bwd], axis=1)
    y = feat @ params["w_out"].T + params["b_out"]
    return jax.nn.log_softmax(y, axis=1)


def init_params(key, embedding_dim, hidden_dim, dict_size, label_size):
    H = hidden_dim // 2
    s_lstm = 1.0 / jnp.sqrt(H)
    s_lin = 1.0 / jnp.sqrt(hidden_dim)
    ks = jax.random.split(key, 12)
    u = lambda k, shape, s: jax.random.uniform(k, shape, jnp.float32, -s, s)
    params = {
        "embedding": jax.random.normal(ks[0], (dict_size, embedding_dim), jnp.float32),
        # forward direction (PyTorch layout, gate order i,f,g,o)
        "wih_f": u(ks[1], (4 * H, embedding_dim), s_lstm),
        "whh_f": u(ks[2], (4 * H, H), s_lstm),
        "b_f": (u(ks[3], (1, 4 * H), s_lstm) + u(ks[4], (1, 4 * H), s_lstm)),  # b_ih + b_hh
        # backward direction
        "wih_b": u(ks[5], (4 * H, embedding_dim), s_lstm),
        "whh_b": u(ks[6], (4 * H, H), s_lstm),
        "b_b": (u(ks[7], (1, 4 * H), s_lstm) + u(ks[8], (1, 4 * H), s_lstm)),
        # hidden2label
        "w_out": u(ks[9], (label_size, hidden_dim), s_lin),
        "b_out": u(ks[10], (1, label_size), s_lin),
    }
    return params


if __name__ == "__main__":
    # Small shapes consistent with the module's forward.
    seq_len = 8
    batch_size = 2
    embedding_dim = 16
    hidden_dim = 32        # 16 per direction
    dict_size = 50
    label_size = 4

    key = jax.random.PRNGKey(0)
    k_tok, k_par = jax.random.split(key)

    params = init_params(k_par, embedding_dim, hidden_dim, dict_size, label_size)

    # sentence: (seq_len, batch) integer token ids
    sentence = jax.random.randint(k_tok, (seq_len, batch_size), 0, dict_size)

    # Embedding lookup (glue, plain JAX gather); x view is already (T, B, E).
    x = jnp.take(params["embedding"], sentence, axis=0).astype(jnp.float32)

    log_probs = bilstm_classifier_forward(x, params, label_size)
    log_probs = jax.block_until_ready(log_probs)

    ref = reference_forward(x, params)
    assert log_probs.shape == (batch_size, label_size)
    assert jnp.allclose(log_probs, ref, atol=1e-3, rtol=1e-3), "mismatch vs reference"

    print("KERNEL_OK")
</pallas_src>

<mosaic_0001>
module attributes {stable_mosaic.version = 11 : i64} {
  func.func @bilstm_classifier_kernel(%arg0: i32, %arg1: memref<8x8x16xf32, #tpu.memory_space<vmem>>, %arg2: memref<16x112xf32, #tpu.memory_space<vmem>>, %arg3: memref<1x112xf32, #tpu.memory_space<vmem>>, %arg4: memref<16x64xf32, #tpu.memory_space<vmem>>, %arg5: memref<32x128xf32, #tpu.memory_space<vmem>>, %arg6: memref<1x128xf32, #tpu.memory_space<vmem>>, %arg7: memref<8x128xf32, #tpu.memory_space<vmem>>) attributes {dimension_semantics = [#tpu.dimension_semantics<parallel>], iteration_bounds = array<i64: 1>, scalar_prefetch = 0 : i64, scratch_operands = 0 : i64, tpu.core_type = #tpu.core_type<tc>, window_params = [{transform_indices = @transform_0, window_bounds = array<i64: 8, 8, 16>}, {pipeline_mode = #tpu.pipeline_mode<synchronous>, transform_indices = @transform_1, window_bounds = array<i64: 16, 112>}, {pipeline_mode = #tpu.pipeline_mode<synchronous>, transform_indices = @transform_2, window_bounds = array<i64: 1, 112>}, {pipeline_mode = #tpu.pipeline_mode<synchronous>, transform_indices = @transform_3, window_bounds = array<i64: 16, 64>}, {pipeline_mode = #tpu.pipeline_mode<synchronous>, transform_indices = @transform_4, window_bounds = array<i64: 32, 128>}, {pipeline_mode = #tpu.pipeline_mode<synchronous>, transform_indices = @transform_5, window_bounds = array<i64: 1, 128>}, {transform_indices = @transform_6, window_bounds = array<i64: 8, 128>}]} {
    %c0 = arith.constant 0 : index
    %c0_0 = arith.constant 0 : index
    %c0_1 = arith.constant 0 : index
    %0 = vector.load %arg1[%c0, %c0_0, %c0_1] : memref<8x8x16xf32, #tpu.memory_space<vmem>>, vector<8x8x16xf32>
    %1 = vector.shape_cast %0 : vector<8x8x16xf32> to vector<64x16xf32>
    %c0_2 = arith.constant 0 : index
    %c0_3 = arith.constant 0 : index
    %2 = vector.load %arg2[%c0_2, %c0_3] : memref<16x112xf32, #tpu.memory_space<vmem>>, vector<16x112xf32>
    %cst = arith.constant dense<0.000000e+00> : vector<64x112xf32>
    %3 = tpu.matmul %1, %2, %cst {dimension_numbers = #tpu.dot_dimension_numbers<[1], [0], [0], [1], [0, 0, 1, 1], [], []>} : vector<64x16xf32>, vector<16x112xf32>, vector<64x112xf32> -> vector<64x112xf32>
    %c0_4 = arith.constant 0 : index
    %c0_5 = arith.constant 0 : index
    %4 = vector.load %arg3[%c0_4, %c0_5] : memref<1x112xf32, #tpu.memory_space<vmem>>, vector<1x112xf32>
    %5 = vector.broadcast %4 : vector<1x112xf32> to vector<64x112xf32>
    %6 = arith.addf %3, %5 : vector<64x112xf32>
    %7 = vector.shape_cast %6 : vector<64x112xf32> to vector<8x8x112xf32>
    %c0_6 = arith.constant 0 : index
    %c0_7 = arith.constant 0 : index
    %8 = vector.load %arg4[%c0_6, %c0_7] : memref<16x64xf32, #tpu.memory_space<vmem>>, vector<16x64xf32>
    %cst_8 = arith.constant 0.000000e+00 : f32
    %9 = vector.broadcast %cst_8 : f32 to vector<8x16xf32>
    %cst_9 = arith.constant 0.000000e+00 : f32
    %10 = vector.broadcast %cst_9 : f32 to vector<8x16xf32>
    %11 = vector.extract_strided_slice %7 {offsets = [0, 0, 0], sizes = [1, 8, 64], strides = [1, 1, 1]} : vector<8x8x112xf32> to vector<1x8x64xf32>
    %12 = vector.shape_cast %11 : vector<1x8x64xf32> to vector<8x64xf32>
    %cst_10 = arith.constant dense<0.000000e+00> : vector<8x64xf32>
    %13 = tpu.matmul %9, %8, %cst_10 {dimension_numbers = #tpu.dot_dimension_numbers<[1], [0], [0], [1], [0, 0, 1, 1], [], []>} : vector<8x16xf32>, vector<16x64xf32>, vector<8x64xf32> -> vector<8x64xf32>
    %14 = arith.addf %12, %13 : vector<8x64xf32>
    %15 = vector.extract_strided_slice %14 {offsets = [0, 0], sizes = [8, 48], strides = [1, 1]} : vector<8x64xf32> to vector<8x48xf32>
    %16 = arith.negf %15 : vector<8x48xf32>
    %17 = math.exp %16 : vector<8x48xf32>
    %cst_11 = arith.constant 1.000000e+00 : f32
    %18 = vector.broadcast %cst_11 : f32 to vector<8x48xf32>
    %19 = arith.addf %18, %17 : vector<8x48xf32>
    %20 = arith.divf %18, %19 : vector<8x48xf32>
    %21 = vector.extract_strided_slice %20 {offsets = [0, 0], sizes = [8, 16], strides = [1, 1]} : vector<8x48xf32> to vector<8x16xf32>
    %22 = vector.extract_strided_slice %20 {offsets = [0, 16], sizes = [8, 16], strides = [1, 1]} : vector<8x48xf32> to vector<8x16xf32>
    %23 = vector.extract_strided_slice %20 {offsets = [0, 32], sizes = [8, 16], strides = [1, 1]} : vector<8x48xf32> to vector<8x16xf32>
    %24 = vector.extract_strided_slice %14 {offsets = [0, 48], sizes = [8, 16], strides = [1, 1]} : vector<8x64xf32> to vector<8x16xf32>
    %25 = math.tanh %24 : vector<8x16xf32>
    %26 = arith.mulf %22, %10 : vector<8x16xf32>
    %27 = arith.mulf %21, %25 : vector<8x16xf32>
    %28 = arith.addf %26, %27 : vector<8x16xf32>
    %29 = math.tanh %28 : vector<8x16xf32>
    %30 = arith.mulf %23, %29 : vector<8x16xf32>
    %31 = vector.extract_strided_slice %7 {offsets = [1, 0, 0], sizes = [1, 8, 64], strides = [1, 1, 1]} : vector<8x8x112xf32> to vector<1x8x64xf32>
    %32 = vector.shape_cast %31 : vector<1x8x64xf32> to vector<8x64xf32>
    %cst_12 = arith.constant dense<0.000000e+00> : vector<8x64xf32>
    %33 = tpu.matmul %30, %8, %cst_12 {dimension_numbers = #tpu.dot_dimension_numbers<[1], [0], [0], [1], [0, 0, 1, 1], [], []>} : vector<8x16xf32>, vector<16x64xf32>, vector<8x64xf32> -> vector<8x64xf32>
    %34 = arith.addf %32, %33 : vector<8x64xf32>
    %35 = vector.extract_strided_slice %34 {offsets = [0, 0], sizes = [8, 48], strides = [1, 1]} : vector<8x64xf32> to vector<8x48xf32>
    %36 = arith.negf %35 : vector<8x48xf32>
    %37 = math.exp %36 : vector<8x48xf32>
    %cst_13 = arith.constant 1.000000e+00 : f32
    %38 = vector.broadcast %cst_13 : f32 to vector<8x48xf32>
    %39 = arith.addf %38, %37 : vector<8x48xf32>
    %40 = arith.divf %38, %39 : vector<8x48xf32>
    %41 = vector.extract_strided_slice %40 {offsets = [0, 0], sizes = [8, 16], strides = [1, 1]} : vector<8x48xf32> to vector<8x16xf32>
    %42 = vector.extract_strided_slice %40 {offsets = [0, 16], sizes = [8, 16], strides = [1, 1]} : vector<8x48xf32> to vector<8x16xf32>
    %43 = vector.extract_strided_slice %40 {offsets = [0, 32], sizes = [8, 16], strides = [1, 1]} : vector<8x48xf32> to vector<8x16xf32>
    %44 = vector.extract_strided_slice %34 {offsets = [0, 48], sizes = [8, 16], strides = [1, 1]} : vector<8x64xf32> to vector<8x16xf32>
    %45 = math.tanh %44 : vector<8x16xf32>
    %46 = arith.mulf %42, %28 : vector<8x16xf32>
    %47 = arith.mulf %41, %45 : vector<8x16xf32>
    %48 = arith.addf %46, %47 : vector<8x16xf32>
    %49 = math.tanh %48 : vector<8x16xf32>
    %50 = arith.mulf %43, %49 : vector<8x16xf32>
    %51 = vector.extract_strided_slice %7 {offsets = [2, 0, 0], sizes = [1, 8, 64], strides = [1, 1, 1]} : vector<8x8x112xf32> to vector<1x8x64xf32>
    %52 = vector.shape_cast %51 : vector<1x8x64xf32> to vector<8x64xf32>
    %cst_14 = arith.constant dense<0.000000e+00> : vector<8x64xf32>
    %53 = tpu.matmul %50, %8, %cst_14 {dimension_numbers = #tpu.dot_dimension_numbers<[1], [0], [0], [1], [0, 0, 1, 1], [], []>} : vector<8x16xf32>, vector<16x64xf32>, vector<8x64xf32> -> vector<8x64xf32>
    %54 = arith.addf %52, %53 : vector<8x64xf32>
    %55 = vector.extract_strided_slice %54 {offsets = [0, 0], sizes = [8, 48], strides = [1, 1]} : vector<8x64xf32> to vector<8x48xf32>
    %56 = arith.negf %55 : vector<8x48xf32>
    %57 = math.exp %56 : vector<8x48xf32>
    %cst_15 = arith.constant 1.000000e+00 : f32
    %58 = vector.broadcast %cst_15 : f32 to vector<8x48xf32>
    %59 = arith.addf %58, %57 : vector<8x48xf32>
    %60 = arith.divf %58, %59 : vector<8x48xf32>
    %61 = vector.extract_strided_slice %60 {offsets = [0, 0], sizes = [8, 16], strides = [1, 1]} : vector<8x48xf32> to vector<8x16xf32>
    %62 = vector.extract_strided_slice %60 {offsets = [0, 16], sizes = [8, 16], strides = [1, 1]} : vector<8x48xf32> to vector<8x16xf32>
    %63 = vector.extract_strided_slice %60 {offsets = [0, 32], sizes = [8, 16], strides = [1, 1]} : vector<8x48xf32> to vector<8x16xf32>
    %64 = vector.extract_strided_slice %54 {offsets = [0, 48], sizes = [8, 16], strides = [1, 1]} : vector<8x64xf32> to vector<8x16xf32>
    %65 = math.tanh %64 : vector<8x16xf32>
    %66 = arith.mulf %62, %48 : vector<8x16xf32>
    %67 = arith.mulf %61, %65 : vector<8x16xf32>
    %68 = arith.addf %66, %67 : vector<8x16xf32>
    %69 = math.tanh %68 : vector<8x16xf32>
    %70 = arith.mulf %63, %69 : vector<8x16xf32>
    %71 = vector.extract_strided_slice %7 {offsets = [3, 0, 0], sizes = [1, 8, 64], strides = [1, 1, 1]} : vector<8x8x112xf32> to vector<1x8x64xf32>
    %72 = vector.shape_cast %71 : vector<1x8x64xf32> to vector<8x64xf32>
    %cst_16 = arith.constant dense<0.000000e+00> : vector<8x64xf32>
    %73 = tpu.matmul %70, %8, %cst_16 {dimension_numbers = #tpu.dot_dimension_numbers<[1], [0], [0], [1], [0, 0, 1, 1], [], []>} : vector<8x16xf32>, vector<16x64xf32>, vector<8x64xf32> -> vector<8x64xf32>
    %74 = arith.addf %72, %73 : vector<8x64xf32>
    %75 = vector.extract_strided_slice %74 {offsets = [0, 0], sizes = [8, 48], strides = [1, 1]} : vector<8x64xf32> to vector<8x48xf32>
    %76 = arith.negf %75 : vector<8x48xf32>
    %77 = math.exp %76 : vector<8x48xf32>
    %cst_17 = arith.constant 1.000000e+00 : f32
    %78 = vector.broadcast %cst_17 : f32 to vector<8x48xf32>
    %79 = arith.addf %78, %77 : vector<8x48xf32>
    %80 = arith.divf %78, %79 : vector<8x48xf32>
    %81 = vector.extract_strided_slice %80 {offsets = [0, 0], sizes = [8, 16], strides = [1, 1]} : vector<8x48xf32> to vector<8x16xf32>
    %82 = vector.extract_strided_slice %80 {offsets = [0, 16], sizes = [8, 16], strides = [1, 1]} : vector<8x48xf32> to vector<8x16xf32>
    %83 = vector.extract_strided_slice %80 {offsets = [0, 32], sizes = [8, 16], strides = [1, 1]} : vector<8x48xf32> to vector<8x16xf32>
    %84 = vector.extract_strided_slice %74 {offsets = [0, 48], sizes = [8, 16], strides = [1, 1]} : vector<8x64xf32> to vector<8x16xf32>
    %85 = math.tanh %84 : vector<8x16xf32>
    %86 = arith.mulf %82, %68 : vector<8x16xf32>
    %87 = arith.mulf %81, %85 : vector<8x16xf32>
    %88 = arith.addf %86, %87 : vector<8x16xf32>
    %89 = math.tanh %88 : vector<8x16xf32>
    %90 = arith.mulf %83, %89 : vector<8x16xf32>
    %91 = vector.extract_strided_slice %7 {offsets = [4, 0, 0], sizes = [1, 8, 64], strides = [1, 1, 1]} : vector<8x8x112xf32> to vector<1x8x64xf32>
    %92 = vector.shape_cast %91 : vector<1x8x64xf32> to vector<8x64xf32>
    %cst_18 = arith.constant dense<0.000000e+00> : vector<8x64xf32>
    %93 = tpu.matmul %90, %8, %cst_18 {dimension_numbers = #tpu.dot_dimension_numbers<[1], [0], [0], [1], [0, 0, 1, 1], [], []>} : vector<8x16xf32>, vector<16x64xf32>, vector<8x64xf32> -> vector<8x64xf32>
    %94 = arith.addf %92, %93 : vector<8x64xf32>
    %95 = vector.extract_strided_slice %94 {offsets = [0, 0], sizes = [8, 48], strides = [1, 1]} : vector<8x64xf32> to vector<8x48xf32>
    %96 = arith.negf %95 : vector<8x48xf32>
    %97 = math.exp %96 : vector<8x48xf32>
    %cst_19 = arith.constant 1.000000e+00 : f32
    %98 = vector.broadcast %cst_19 : f32 to vector<8x48xf32>
    %99 = arith.addf %98, %97 : vector<8x48xf32>
    %100 = arith.divf %98, %99 : vector<8x48xf32>
    %101 = vector.extract_strided_slice %100 {offsets = [0, 0], sizes = [8, 16], strides = [1, 1]} : vector<8x48xf32> to vector<8x16xf32>
    %102 = vector.extract_strided_slice %100 {offsets = [0, 16], sizes = [8, 16], strides = [1, 1]} : vector<8x48xf32> to vector<8x16xf32>
    %103 = vector.extract_strided_slice %100 {offsets = [0, 32], sizes = [8, 16], strides = [1, 1]} : vector<8x48xf32> to vector<8x16xf32>
    %104 = vector.extract_strided_slice %94 {offsets = [0, 48], sizes = [8, 16], strides = [1, 1]} : vector<8x64xf32> to vector<8x16xf32>
    %105 = math.tanh %104 : vector<8x16xf32>
    %106 = arith.mulf %102, %88 : vector<8x16xf32>
    %107 = arith.mulf %101, %105 : vector<8x16xf32>
    %108 = arith.addf %106, %107 : vector<8x16xf32>
    %109 = math.tanh %108 : vector<8x16xf32>
    %110 = arith.mulf %103, %109 : vector<8x16xf32>
    %111 = vector.extract_strided_slice %7 {offsets = [5, 0, 0], sizes = [1, 8, 64], strides = [1, 1, 1]} : vector<8x8x112xf32> to vector<1x8x64xf32>
    %112 = vector.shape_cast %111 : vector<1x8x64xf32> to vector<8x64xf32>
    %cst_20 = arith.constant dense<0.000000e+00> : vector<8x64xf32>
    %113 = tpu.matmul %110, %8, %cst_20 {dimension_numbers = #tpu.dot_dimension_numbers<[1], [0], [0], [1], [0, 0, 1, 1], [], []>} : vector<8x16xf32>, vector<16x64xf32>, vector<8x64xf32> -> vector<8x64xf32>
    %114 = arith.addf %112, %113 : vector<8x64xf32>
    %115 = vector.extract_strided_slice %114 {offsets = [0, 0], sizes = [8, 48], strides = [1, 1]} : vector<8x64xf32> to vector<8x48xf32>
    %116 = arith.negf %115 : vector<8x48xf32>
    %117 = math.exp %116 : vector<8x48xf32>
    %cst_21 = arith.constant 1.000000e+00 : f32
    %118 = vector.broadcast %cst_21 : f32 to vector<8x48xf32>
    %119 = arith.addf %118, %117 : vector<8x48xf32>
    %120 = arith.divf %118, %119 : vector<8x48xf32>
    %121 = vector.extract_strided_slice %120 {offsets = [0, 0], sizes = [8, 16], strides = [1, 1]} : vector<8x48xf32> to vector<8x16xf32>
    %122 = vector.extract_strided_slice %120 {offsets = [0, 16], sizes = [8, 16], strides = [1, 1]} : vector<8x48xf32> to vector<8x16xf32>
    %123 = vector.extract_strided_slice %120 {offsets = [0, 32], sizes = [8, 16], strides = [1, 1]} : vector<8x48xf32> to vector<8x16xf32>
    %124 = vector.extract_strided_slice %114 {offsets = [0, 48], sizes = [8, 16], strides = [1, 1]} : vector<8x64xf32> to vector<8x16xf32>
    %125 = math.tanh %124 : vector<8x16xf32>
    %126 = arith.mulf %122, %108 : vector<8x16xf32>
    %127 = arith.mulf %121, %125 : vector<8x16xf32>
    %128 = arith.addf %126, %127 : vector<8x16xf32>
    %129 = math.tanh %128 : vector<8x16xf32>
    %130 = arith.mulf %123, %129 : vector<8x16xf32>
    %131 = vector.extract_strided_slice %7 {offsets = [6, 0, 0], sizes = [1, 8, 64], strides = [1, 1, 1]} : vector<8x8x112xf32> to vector<1x8x64xf32>
    %132 = vector.shape_cast %131 : vector<1x8x64xf32> to vector<8x64xf32>
    %cst_22 = arith.constant dense<0.000000e+00> : vector<8x64xf32>
    %133 = tpu.matmul %130, %8, %cst_22 {dimension_numbers = #tpu.dot_dimension_numbers<[1], [0], [0], [1], [0, 0, 1, 1], [], []>} : vector<8x16xf32>, vector<16x64xf32>, vector<8x64xf32> -> vector<8x64xf32>
    %134 = arith.addf %132, %133 : vector<8x64xf32>
    %135 = vector.extract_strided_slice %134 {offsets = [0, 0], sizes = [8, 48], strides = [1, 1]} : vector<8x64xf32> to vector<8x48xf32>
    %136 = arith.negf %135 : vector<8x48xf32>
    %137 = math.exp %136 : vector<8x48xf32>
    %cst_23 = arith.constant 1.000000e+00 : f32
    %138 = vector.broadcast %cst_23 : f32 to vector<8x48xf32>
    %139 = arith.addf %138, %137 : vector<8x48xf32>
    %140 = arith.divf %138, %139 : vector<8x48xf32>
    %141 = vector.extract_strided_slice %140 {offsets = [0, 0], sizes = [8, 16], strides = [1, 1]} : vector<8x48xf32> to vector<8x16xf32>
    %142 = vector.extract_strided_slice %140 {offsets = [0, 16], sizes = [8, 16], strides = [1, 1]} : vector<8x48xf32> to vector<8x16xf32>
    %143 = vector.extract_strided_slice %140 {offsets = [0, 32], sizes = [8, 16], strides = [1, 1]} : vector<8x48xf32> to vector<8x16xf32>
    %144 = vector.extract_strided_slice %134 {offsets = [0, 48], sizes = [8, 16], strides = [1, 1]} : vector<8x64xf32> to vector<8x16xf32>
    %145 = math.tanh %144 : vector<8x16xf32>
    %146 = arith.mulf %142, %128 : vector<8x16xf32>
    %147 = arith.mulf %141, %145 : vector<8x16xf32>
    %148 = arith.addf %146, %147 : vector<8x16xf32>
    %149 = math.tanh %148 : vector<8x16xf32>
    %150 = arith.mulf %143, %149 : vector<8x16xf32>
    %151 = vector.extract_strided_slice %7 {offsets = [7, 0, 0], sizes = [1, 8, 64], strides = [1, 1, 1]} : vector<8x8x112xf32> to vector<1x8x64xf32>
    %152 = vector.shape_cast %151 : vector<1x8x64xf32> to vector<8x64xf32>
    %cst_24 = arith.constant dense<0.000000e+00> : vector<8x64xf32>
    %153 = tpu.matmul %150, %8, %cst_24 {dimension_numbers = #tpu.dot_dimension_numbers<[1], [0], [0], [1], [0, 0, 1, 1], [], []>} : vector<8x16xf32>, vector<16x64xf32>, vector<8x64xf32> -> vector<8x64xf32>
    %154 = arith.addf %152, %153 : vector<8x64xf32>
    %155 = vector.extract_strided_slice %154 {offsets = [0, 0], sizes = [8, 48], strides = [1, 1]} : vector<8x64xf32> to vector<8x48xf32>
    %156 = arith.negf %155 : vector<8x48xf32>
    %157 = math.exp %156 : vector<8x48xf32>
    %cst_25 = arith.constant 1.000000e+00 : f32
    %158 = vector.broadcast %cst_25 : f32 to vector<8x48xf32>
    %159 = arith.addf %158, %157 : vector<8x48xf32>
    %160 = arith.divf %158, %159 : vector<8x48xf32>
    %161 = vector.extract_strided_slice %160 {offsets = [0, 0], sizes = [8, 16], strides = [1, 1]} : vector<8x48xf32> to vector<8x16xf32>
    %162 = vector.extract_strided_slice %160 {offsets = [0, 16], sizes = [8, 16], strides = [1, 1]} : vector<8x48xf32> to vector<8x16xf32>
    %163 = vector.extract_strided_slice %160 {offsets = [0, 32], sizes = [8, 16], strides = [1, 1]} : vector<8x48xf32> to vector<8x16xf32>
    %164 = vector.extract_strided_slice %154 {offsets = [0, 48], sizes = [8, 16], strides = [1, 1]} : vector<8x64xf32> to vector<8x16xf32>
    %165 = math.tanh %164 : vector<8x16xf32>
    %166 = arith.mulf %162, %148 : vector<8x16xf32>
    %167 = arith.mulf %161, %165 : vector<8x16xf32>
    %168 = arith.addf %166, %167 : vector<8x16xf32>
    %169 = math.tanh %168 : vector<8x16xf32>
    %170 = arith.mulf %163, %169 : vector<8x16xf32>
    %171 = vector.extract_strided_slice %7 {offsets = [7, 0, 64], sizes = [1, 8, 48], strides = [1, 1, 1]} : vector<8x8x112xf32> to vector<1x8x48xf32>
    %172 = vector.shape_cast %171 : vector<1x8x48xf32> to vector<8x48xf32>
    %173 = vector.extract_strided_slice %172 {offsets = [0, 0], sizes = [8, 32], strides = [1, 1]} : vector<8x48xf32> to vector<8x32xf32>
    %174 = arith.negf %173 : vector<8x32xf32>
    %175 = math.exp %174 : vector<8x32xf32>
    %cst_26 = arith.constant 1.000000e+00 : f32
    %176 = vector.broadcast %cst_26 : f32 to vector<8x32xf32>
    %177 = arith.addf %176, %175 : vector<8x32xf32>
    %178 = arith.divf %176, %177 : vector<8x32xf32>
    %179 = vector.extract_strided_slice %178 {offsets = [0, 0], sizes = [8, 16], strides = [1, 1]} : vector<8x32xf32> to vector<8x16xf32>
    %180 = vector.extract_strided_slice %178 {offsets = [0, 16], sizes = [8, 16], strides = [1, 1]} : vector<8x32xf32> to vector<8x16xf32>
    %181 = vector.extract_strided_slice %172 {offsets = [0, 32], sizes = [8, 16], strides = [1, 1]} : vector<8x48xf32> to vector<8x16xf32>
    %182 = math.tanh %181 : vector<8x16xf32>
    %183 = arith.mulf %179, %182 : vector<8x16xf32>
    %184 = math.tanh %183 : vector<8x16xf32>
    %185 = arith.mulf %180, %184 : vector<8x16xf32>
    %186 = tpu.concatenate %170, %185 in 1 : vector<8x16xf32>, vector<8x16xf32> -> vector<8x32xf32>
    %c0_27 = arith.constant 0 : index
    %c0_28 = arith.constant 0 : index
    %187 = vector.load %arg5[%c0_27, %c0_28] : memref<32x128xf32, #tpu.memory_space<vmem>>, vector<32x128xf32>
    %cst_29 = arith.constant dense<0.000000e+00> : vector<8x128xf32>
    %188 = tpu.matmul %186, %187, %cst_29 {dimension_numbers = #tpu.dot_dimension_numbers<[1], [0], [0], [1], [0, 0, 1, 1], [], []>} : vector<8x32xf32>, vector<32x128xf32>, vector<8x128xf32> -> vector<8x128xf32>
    %c0_30 = arith.constant 0 : index
    %c0_31 = arith.constant 0 : index
    %189 = vector.load %arg6[%c0_30, %c0_31] : memref<1x128xf32, #tpu.memory_space<vmem>>, vector<1x128xf32>
    %190 = vector.broadcast %189 : vector<1x128xf32> to vector<8x128xf32>
    %191 = arith.addf %188, %190 : vector<8x128xf32>
    %cst_32 = arith.constant dense<0xFF800000> : vector<8xf32>
    %192 = vector.multi_reduction <maximumf>, %191, %cst_32 [1] : vector<8x128xf32> to vector<8xf32>
    %193 = vector.shape_cast %192 : vector<8xf32> to vector<8x1xf32>
    %194 = vector.broadcast %193 : vector<8x1xf32> to vector<8x128xf32>
    %195 = arith.subf %191, %194 : vector<8x128xf32>
    %196 = math.exp %195 : vector<8x128xf32>
    %cst_33 = arith.constant dense<0.000000e+00> : vector<8xf32>
    %197 = vector.multi_reduction <add>, %196, %cst_33 [1] : vector<8x128xf32> to vector<8xf32>
    %198 = vector.shape_cast %197 : vector<8xf32> to vector<8x1xf32>
    %199 = math.log %198 : vector<8x1xf32>
    %200 = vector.broadcast %199 : vector<8x1xf32> to vector<8x128xf32>
    %201 = arith.subf %195, %200 : vector<8x128xf32>
    %c0_34 = arith.constant 0 : index
    %c0_35 = arith.constant 0 : index
    %202 = vector.load %arg7[%c0_34, %c0_35] : memref<8x128xf32, #tpu.memory_space<vmem>>, vector<8x128xf32>
    tpu.vector_store %arg7[%c0_34, %c0_35], %201 {strides = array<i32>} : memref<8x128xf32, #tpu.memory_space<vmem>>, vector<8x128xf32>,
    return
  }
  func.func @transform_0(%arg0: i32) -> (i32, i32, i32) {
    %c0_i32 = arith.constant 0 : i32
    %c0_i32_0 = arith.constant 0 : i32
    %c0_i32_1 = arith.constant 0 : i32
    return %c0_i32, %arg0, %c0_i32_0 : i32, i32, i32
  }
  func.func @transform_1(%arg0: i32) -> (i32, i32) {
    %c0_i32 = arith.constant 0 : i32
    %c0_i32_0 = arith.constant 0 : i32
    %c0_i32_1 = arith.constant 0 : i32
    return %c0_i32, %c0_i32_0 : i32, i32
  }
  func.func @transform_2(%arg0: i32) -> (i32, i32) {
    %c0_i32 = arith.constant 0 : i32
    %c0_i32_0 = arith.constant 0 : i32
    %c0_i32_1 = arith.constant 0 : i32
    return %c0_i32, %c0_i32_0 : i32, i32
  }
  func.func @transform_3(%arg0: i32) -> (i32, i32) {
    %c0_i32 = arith.constant 0 : i32
    %c0_i32_0 = arith.constant 0 : i32
    %c0_i32_1 = arith.constant 0 : i32
    return %c0_i32, %c0_i32_0 : i32, i32
  }
  func.func @transform_4(%arg0: i32) -> (i32, i32) {
    %c0_i32 = arith.constant 0 : i32
    %c0_i32_0 = arith.constant 0 : i32
    %c0_i32_1 = arith.constant 0 : i32
    return %c0_i32, %c0_i32_0 : i32, i32
  }
  func.func @transform_5(%arg0: i32) -> (i32, i32) {
    %c0_i32 = arith.constant 0 : i32
    %c0_i32_0 = arith.constant 0 : i32
    %c0_i32_1 = arith.constant 0 : i32
    return %c0_i32, %c0_i32_0 : i32, i32
  }
  func.func @transform_6(%arg0: i32) -> (i32, i32) {
    %c0_i32 = arith.constant 0 : i32
    %c0_i32_0 = arith.constant 0 : i32
    return %arg0, %c0_i32 : i32, i32
  }
}

</mosaic_0001>

<bundles_post_ra>
// kernel: tpu_custom_call.1
= control target key start
LH: loop header
LB: loop body
LE: loop exit
PB: predicated region body
PF: predicated region fallthrough
CT: control target
= control target key end

     0   :  { %11 = vsyncpa [#allocation3], 0  ;;  %s1722_s0 = inlined_call_operand.hbm [shape: f32[8,8,16], index: 0, kind: input, shape index: {}]   ;;  %s1723_s1 = inlined_call_operand.hbm [shape: f32[16,112], index: 1, kind: input, shape index: {}]   ;;  %s1724_s2 = inlined_call_operand.vmem [shape: f32[1,112], index: 2, kind: input, shape index: {}]   ;;  %s1725_s3 = inlined_call_operand.hbm [shape: f32[16,64], index: 3, kind: input, shape index: {}]   ;;  %s1726_s4 = inlined_call_operand.hbm [shape: f32[32,128], index: 4, kind: input, shape index: {}]   ;;  %s1727_s5 = inlined_call_operand.vmem [shape: f32[1,128], index: 5, kind: input, shape index: {}]   ;;  %s1728_s6 = inlined_call_operand.hbm [shape: f32[8,128], index: 6, kind: output, shape index: {}]  }
   0x1   :  { %12 = vsyncpa [#allocation6], 0 }
   0x2   :  { %13 = vsyncpa [#allocation9], 0 }
   0x3   :  { %14 = vsyncpa [#allocation4], 0  ;;  %s1516_s21 = smov [#allocation5]   ;;  %s1517_s23 = smov [#allocation2]  }
   0x4   :  { %s32_s22 = sshll.u32 %s1516_s21, 4  ;;  %s20_s24 = sshll.u32 %s1517_s23, 4  ;;  %s33_s22 = int_to_ptr.vmem [resolvable:$true] %s32_s22  ;;  %s21_s24 = int_to_ptr.vmem [resolvable:$true] %s20_s24 }
   0x5   :  { %s1416_s25 = scalar_lea.vmem %s33_s22, 256  ;;  %p1421_p1 = scmp.lt.s32.totalorder %s33_s22, %s33_s22 }
   0x6   :  { %p1417_p0 = scmp.ne.s32.totalorder %s33_s22, %s1416_s25  ;;  %p1422_p2 = scmp.lt.s32.totalorder %s1416_s25, %s1416_s25 }
   0x8   :  { %p1423_p3 = por %p1422_p2, %p1421_p1 }
   0xa   :  { %p1424_p4 = pnand %p1423_p3, %p1417_p0 }
   0xc   :  { %1427 = shalt.err (!%p1424_p4)
}
   0xd   :  { %s1518_s26 = smov 128   ;;  %s1519_s27 = smov 8  }
   0xe   :  { %38 = dma.hbm_to_vmem [thread:$0]  %s1723_s1, 256, %s33_s22, [#allocation6], %s1518_s26, %s1518_s26, %s1519_s27  }
   0xf   :  { %s1436_s30 = scalar_lea.vmem %s21_s24, 1024  ;;  %p1441_p6 = scmp.lt.s32.totalorder %s21_s24, %s21_s24 }
  0x10   :  { %p1437_p5 = scmp.ne.s32.totalorder %s21_s24, %s1436_s30  ;;  %p1442_p7 = scmp.lt.s32.totalorder %s1436_s30, %s1436_s30 }
  0x12   :  { %p1443_p8 = por %p1442_p7, %p1441_p6 }
  0x14   :  { %p1444_p9 = pnand %p1443_p8, %p1437_p5 }
  0x16   :  { %1447 = shalt.err (!%p1444_p9)
}
  0x17   :  { %26 = dma.hbm_to_vmem [thread:$0]  %s1722_s0, 1024, %s21_s24, [#allocation3], %s1518_s26, %s1518_s26, %s1519_s27  }
  0x18   :  { %s1520_s9 = smov [#allocation7]   ;;  %s1521_s11 = smov [#allocation8]  }
  0x19   :  { %s46_s10 = sshll.u32 %s1520_s9, 4  ;;  %s58_s12 = sshll.u32 %s1521_s11, 4  ;;  %s47_s10 = int_to_ptr.vmem [resolvable:$true] %s46_s10  ;;  %s59_s12 = int_to_ptr.vmem [resolvable:$true] %s58_s12 }
  0x1a   :  { %s1456_s1 = scalar_lea.vmem %s47_s10, 256  ;;  %p1461_p11 = scmp.lt.s32.totalorder %s47_s10, %s47_s10 }
  0x1b   :  { %p1457_p10 = scmp.ne.s32.totalorder %s47_s10, %s1456_s1  ;;  %p1462_p12 = scmp.lt.s32.totalorder %s1456_s1, %s1456_s1 }
  0x1d   :  { %p1463_p13 = por %p1462_p12, %p1461_p11 }
  0x1f   :  { %p1464_p0 = pnand %p1463_p13, %p1457_p10 }
  0x21   :  { %1467 = shalt.err (!%p1464_p0)
}
  0x22   :  { %52 = dma.hbm_to_vmem [thread:$0]  %s1725_s3, 256, %s47_s10, [#allocation6], %s1518_s26, %s1518_s26, %s1519_s27  }
  0x23   :  { %s1476_s0 = scalar_lea.vmem %s59_s12, 512  ;;  %p1481_p2 = scmp.lt.s32.totalorder %s59_s12, %s59_s12 }
  0x24   :  { %p1477_p1 = scmp.ne.s32.totalorder %s59_s12, %s1476_s0  ;;  %p1482_p3 = scmp.lt.s32.totalorder %s1476_s0, %s1476_s0 }
  0x26   :  { %p1483_p4 = por %p1482_p3, %p1481_p2 }
  0x28   :  { %p1484_p5 = pnand %p1483_p4, %p1477_p1 }
  0x2a   :  { %1487 = shalt.err (!%p1484_p5)
}
  0x2b   :  { %64 = dma.hbm_to_vmem [thread:$0]  %s1726_s4, 512, %s59_s12, [#allocation9], %s1518_s26, %s1518_s26, %s1519_s27  }
  0x2c   :  { %1508 = dma.done.wait [#allocation3], 1024  }
  0x2d   :  { %1509 = vsyncadd [#allocation3], 4294966272 }
  0x2e   :  { %1510 = dma.done.wait [#allocation6], 512  }
  0x2f   :  { %1511 = vsyncadd [#allocation6], 4294966784 }
  0x30   :  { %1512 = dma.done.wait [#allocation9], 512  }
  0x31   :  { %1513 = vsyncadd [#allocation9], 4294966784  ;;  %v88_v0 = vld [vmem:[#allocation5 + $0x8] sm:$0xff]  ;;  %v87_v1 = vld [vmem:[#allocation5] sm:$0xff]  ;;  %vm96_vm0 = vcmask 130048   ;;  %v1522_v7 = vmov 0.0  }
  0x32   :  { %1232 = vmatprep.subr.mxu0 %v88_v0  ;;  %1315 = vmatprep.subr.mxu1 %v88_v0  ;;  %v79_v2 = vld [vmem:[#allocation2] sm:$0xff]  ;;  %v85_v3 = vld [vmem:[#allocation2 + $0x30] sm:$0xff]  ;;  %v80_v4 = vld [vmem:[#allocation2 + $0x8] sm:$0xff]  ;;  %vm1523_vm1 = vmmov 0   ;;  %s1524_s17 = smov 80   ;;  %s1526_s18 = smov 96  }
  0x33   :  { %1233 = vmatpush3.msra.mxu0 %v88_v0  ;;  %1317 = vmatpush3.msra.mxu1 %v88_v0  ;;  %v86_v5 = vld [vmem:[#allocation2 + $0x38] sm:$0xff]  ;;  %v1595_v8 = vld [vmem:[#allocation7] sm:$0xff]  ;;  %v1620_v11 = vld [vmem:[%s1724_s2] ss:$0 sm:$0xff]  ;;  %s1525_s2 = smov 16   ;;  %s1527_s19 = smov 64  }
  0x34   :  { %1234 = vmatprep.subr.mxu0 %v87_v1  ;;  %1316 = vmatprep.subr.mxu1 %v87_v1  ;;  %v1590_v6 = vld [vmem:[#allocation7 + $0x8] sm:$0xff]  ;;  %v81_v46 = vld [vmem:[#allocation2 + $0x10] sm:$0xff]  ;;  %vm1064_vm2 = vcmask 261120   ;;  %s1528_s22 = smov [#allocation10]  }
  0x35   :  { %1235 = vmatpush3.msra.mxu0 %v87_v1  ;;  %1318 = vmatpush3.msra.mxu1 %v87_v1  ;;  %v82_v47 = vld [vmem:[#allocation2 + $0x18] sm:$0xff]  ;;  %s1155_s23 = sshll.u32 %s1528_s22, 4  ;;  %s1156_s23 = int_to_ptr.vmem [resolvable:$true] %s1155_s23 }
  0x36   :  { %1236 = vmatprep.mubr.msk.f32.mxu0 %vm96_vm0, %v79_v2  ;;  %1245 = vmatprep.mubr.msk.f32.mxu1 %vm96_vm0, %v85_v3  ;;  %p1493_p7 = scmp.lt.s32.totalorder %s1156_s23, %s1156_s23 }
  0x37   :  { %1237 = vmatmul.mubr.msk.f32.vlgmr.msra.gmra.mxu0 %vm96_vm0, %v80_v4  ;;  %1246 = vmatmul.mubr.msk.f32.vlgmr.msra.gmra.mxu1 %vm96_vm0, %v86_v5 }
  0x38   :  { %1248 = vmatprep.subr.mxu1 %v1522_v7  ;;  %1252 = vmatprep.mubr.msk.f32.mxu1 %vm1523_vm1, %v1522_v7 }
  0x39   :  { %1249 = vmatpush3.msra.mxu1 %v1590_v6  ;;  %1276 = vmatprep.subr.mxu0 %v1522_v7 }
  0x3a   :  { %1250 = vmatprep.subr.mxu1 %v1522_v7  ;;  %1277 = vmatpush3.msra.mxu0 %v1590_v6 }
  0x3b   :  { %1251 = vmatpush3.msra.mxu1 %v1595_v8  ;;  %1278 = vmatprep.subr.mxu0 %v1522_v7 }
  0x3c   :  { %1253 = vmatmul.mubr.f32.vlgmr.msra.gmra.mxu1 %v1522_v7  ;;  %1255 = vmatprep.subr.mxu1 %v1522_v7 }
  0x3d   :  { %1256 = vmatpush3.msra.mxu1 %v1590_v6  ;;  %1259 = vmatprep.mubr.msk.f32.mxu1 %vm1523_vm1, %v1522_v7 }
  0x3e   :  { %1257 = vmatprep.subr.mxu1 %v1522_v7  ;;  %1279 = vmatpush3.msra.mxu0 %v1595_v8 }
  0x3f   :  { %1258 = vmatpush3.msra.mxu1 %v1595_v8  ;;  %1290 = vmatprep.subr.mxu0 %v1522_v7 }
  0x40   :  { %1262 = vmatprep.subr.mxu1 %v1522_v7  ;;  %1239 = vmatprep.mubr.msk.f32.mxu0 %vm96_vm0, %v81_v46 }
  0x41   :  { %1240 = vmatmul.mubr.msk.f32.gmra.mxu0 %vm96_vm0, %v82_v47 }
  0xf7   :  { %v1238_v9 = vpop.f32.mrf.mxu0  ;;  %v1615_v10 = vpop.f32.mrf.mxu1 }
  0xf8   :  { %v193_v32 = vadd.f32 %v1238_v9, %v1620_v11 }
  0xf9   :  { %v187_v12 = vpop.f32.mrf.mxu0  ;;  %v1622_v13 = vpop.f32.mrf.mxu1 }
  0xfa   :  { %v188_v14 = vadd.f32 %v1620_v11, %v187_v12 }
  0xfc   :  { %v297_v15 = vpop.f32.mrf.mxu1 }
  0xfd   :  { %v301_v16 = vadd.f32 %v297_v15, %v188_v14 }
  0xfe   :  { %v1254_v17 = vpop.f32.mrf.mxu1 }
  0xff   :  { %1332 = vtanh.f32 %v301_v16  ;;  %v1175_v19 = vmul.f32 -1.442695, %v301_v16 }
 0x101   :  { %1334 = vpow2.f32 %v1175_v19  ;;  %v1241_v52 = vpop.f32.mrf.mxu0 }
 0x102   :  { %v203_v14 = vadd.f32 %v1241_v52, %v1620_v11 }
 0x103   :  { %v197_v53 = vpop.f32.mrf.mxu0 }
 0x104   :  { %v198_v54 = vadd.f32 %v1620_v11, %v197_v53 }
 0x10c   :  { %v1333_v18 = vpop.eup %1332 }
 0x10d   :  { %311 = vrot.lane.b32.xlu0 %v1333_v18, %s1524_s17 }
 0x10e   :  { %v1335_v20 = vpop.eup %1334 }
 0x10f   :  { %v305_v21 = vadd.f32 1.0, %v1335_v20 }
 0x111   :  { %1336 = vrcp.f32 %v305_v21 }
 0x11e   :  { %v1337_v22 = vpop.eup %1336 }
 0x11f   :  { %v309_v25 = vmul.f32 0.0, %v1337_v22 }
 0x17f   :  { %v312_v23 = vpop.permute.xlu0 %311 }
 0x180   :  { %v314_v24 = vmul.f32 %v1337_v22, %v312_v23 }
 0x182   :  { %316 = vrot.lane.b32.xlu0 %v314_v24, %s1525_s2 }
 0x1f4   :  { %v317_v26 = vpop.permute.xlu0 %316 }
 0x1f5   :  { %v319_v27 = vadd.f32 %v317_v26, %v309_v25 }
 0x1f7   :  { %1338 = vtanh.f32 %v319_v27 }
 0x204   :  { %v1339_v28 = vpop.eup %1338 }
 0x205   :  { %322 = vrot.lane.b32.xlu1 %v1339_v28, %s1525_s2  ;;  %v83_v28 = vld [vmem:[#allocation2 + $0x20] sm:$0xff] }
 0x206   :  { %1242 = vmatprep.mubr.msk.f32.mxu0 %vm96_vm0, %v83_v28 }
 0x277   :  { %v323_v29 = vpop.permute.xlu1 %322 }
 0x278   :  { %v325_v30 = vmul.f32 %v1337_v22, %v323_v29  ;;  %v84_v29 = vld [vmem:[#allocation2 + $0x28] sm:$0xff] }
 0x279   :  { %1243 = vmatmul.mubr.msk.f32.gmra.mxu0 %vm96_vm0, %v84_v29  ;;  %v223_v29 = vadd.f32 %v1615_v10, %v1620_v11 }
 0x27a   :  { %327 = vrot.lane.b32.xlu1 %v325_v30, %s1526_s18  ;;  %1280 = vmatprep.mubr.msk.f32.mxu0 %vm1523_vm1, %v1522_v7 }
 0x2ec   :  { %v328_v31 = vpop.permute.xlu1 %327 }
 0x2ed   :  { %1260 = vmatmul.mubr.msk.f32.vlgmr.msra.gmra.mxu1 %vm96_vm0, %v328_v31 }
 0x2ee   :  { %1263 = vmatpush3.msra.mxu1 %v1590_v6  ;;  %1266 = vmatprep.mubr.msk.f32.mxu1 %vm1523_vm1, %v1522_v7 }
 0x2ef   :  { %1264 = vmatprep.subr.mxu1 %v1522_v7 }
 0x2f0   :  { %1265 = vmatpush3.msra.mxu1 %v1595_v8 }
 0x2f1   :  { %1269 = vmatprep.subr.mxu1 %v1522_v7 }
 0x3ad   :  { %v397_v33 = vpop.f32.mrf.mxu1 }
 0x3ae   :  { %v401_v34 = vadd.f32 %v397_v33, %v193_v32 }
 0x3af   :  { %v1261_v35 = vpop.f32.mrf.mxu1 }
 0x3b0   :  { %1340 = vtanh.f32 %v401_v34  ;;  %v1177_v37 = vmul.f32 -1.442695, %v401_v34  ;;  %v1244_v34 = vpop.f32.mrf.mxu0 }
 0x3b2   :  { %1342 = vpow2.f32 %v1177_v37  ;;  %v207_v35 = vpop.f32.mrf.mxu0 }
 0x3bd   :  { %v1341_v36 = vpop.eup %1340 }
 0x3be   :  { %411 = vrot.lane.b32.xlu0 %v1341_v36, %s1524_s17  ;;  %v208_v36 = vadd.f32 %v1620_v11, %v207_v35 }
 0x3bf   :  { %v1343_v38 = vpop.eup %1342 }
 0x3c0   :  { %v405_v39 = vadd.f32 1.0, %v1343_v38 }
 0x3c2   :  { %1344 = vrcp.f32 %v405_v39 }
 0x3cf   :  { %v1345_v40 = vpop.eup %1344 }
 0x3d0   :  { %v409_v43 = vmul.f32 %v1345_v40, %v319_v27 }
 0x430   :  { %v412_v41 = vpop.permute.xlu0 %411 }
 0x431   :  { %v414_v42 = vmul.f32 %v1345_v40, %v412_v41 }
 0x433   :  { %416 = vrot.lane.b32.xlu1 %v414_v42, %s1525_s2 }
 0x4a5   :  { %v417_v44 = vpop.permute.xlu1 %416 }
 0x4a6   :  { %v419_v45 = vadd.f32 %v417_v44, %v409_v43 }
 0x4a8   :  { %1346 = vtanh.f32 %v419_v45 }
 0x4b5   :  { %v1347_v48 = vpop.eup %1346 }
 0x4b6   :  { %422 = vrot.lane.b32.xlu0 %v1347_v48, %s1525_s2 }
 0x528   :  { %v423_v49 = vpop.permute.xlu0 %422 }
 0x529   :  { %v425_v50 = vmul.f32 %v1345_v40, %v423_v49 }
 0x52b   :  { %427 = vrot.lane.b32.xlu1 %v425_v50, %s1526_s18 }
 0x59d   :  { %v428_v51 = vpop.permute.xlu1 %427 }
 0x59e   :  { %1267 = vmatmul.mubr.msk.f32.vlgmr.msra.gmra.mxu1 %vm96_vm0, %v428_v51 }
 0x59f   :  { %1270 = vmatpush3.msra.mxu1 %v1590_v6  ;;  %1273 = vmatprep.mubr.msk.f32.mxu1 %vm1523_vm1, %v1522_v7 }
 0x5a0   :  { %1271 = vmatprep.subr.mxu1 %v1522_v7 }
 0x5a1   :  { %1272 = vmatpush3.msra.mxu1 %v1595_v8 }
 0x5a2   :  { %1283 = vmatprep.subr.mxu1 %v1522_v7 }
 0x65e   :  { %v497_v55 = vpop.f32.mrf.mxu1 }
 0x65f   :  { %v501_v56 = vadd.f32 %v497_v55, %v198_v54  ;;  %v213_v54 = vadd.f32 %v1244_v34, %v1620_v11 }
 0x660   :  { %v1268_v57 = vpop.f32.mrf.mxu1 }
 0x661   :  { %1348 = vtanh.f32 %v501_v56  ;;  %v1179_v59 = vmul.f32 -1.442695, %v501_v56 }
 0x663   :  { %1350 = vpow2.f32 %v1179_v59 }
 0x66e   :  { %v1349_v58 = vpop.eup %1348 }
 0x66f   :  { %511 = vrot.lane.b32.xlu0 %v1349_v58, %s1524_s17 }
 0x670   :  { %v1351_v60 = vpop.eup %1350 }
 0x671   :  { %v505_v61 = vadd.f32 1.0, %v1351_v60 }
 0x673   :  { %1352 = vrcp.f32 %v505_v61 }
 0x680   :  { %v1353_v62 = vpop.eup %1352 }
 0x681   :  { %v509_v1 = vmul.f32 %v1353_v62, %v419_v45 }
 0x6e1   :  { %v512_v63 = vpop.permute.xlu0 %511 }
 0x6e2   :  { %v514_v0 = vmul.f32 %v1353_v62, %v512_v63 }
 0x6e4   :  { %516 = vrot.lane.b32.xlu1 %v514_v0, %s1525_s2 }
 0x756   :  { %v517_v2 = vpop.permute.xlu1 %516 }
 0x757   :  { %v519_v3 = vadd.f32 %v517_v2, %v509_v1 }
 0x759   :  { %1354 = vtanh.f32 %v519_v3 }
 0x766   :  { %v1355_v4 = vpop.eup %1354 }
 0x767   :  { %522 = vrot.lane.b32.xlu0 %v1355_v4, %s1525_s2 }
 0x7d9   :  { %v523_v5 = vpop.permute.xlu0 %522 }
 0x7da   :  { %v525_v9 = vmul.f32 %v1353_v62, %v523_v5 }
 0x7dc   :  { %527 = vrot.lane.b32.xlu1 %v525_v9, %s1526_s18  ;;  %v218_v9 = vadd.f32 %v1620_v11, %v1622_v13 }
 0x84e   :  { %v528_v12 = vpop.permute.xlu1 %527 }
 0x84f   :  { %1274 = vmatmul.mubr.msk.f32.vlgmr.msra.gmra.mxu1 %vm96_vm0, %v528_v12 }
 0x850   :  { %1284 = vmatpush3.msra.mxu1 %v1590_v6  ;;  %1287 = vmatprep.mubr.msk.f32.mxu1 %vm1523_vm1, %v1522_v7 }
 0x851   :  { %1285 = vmatprep.subr.mxu1 %v1522_v7 }
 0x852   :  { %1286 = vmatpush3.msra.mxu1 %v1595_v8 }
 0x853   :  { %1297 = vmatprep.subr.mxu1 %v1522_v7 }
 0x90f   :  { %v597_v15 = vpop.f32.mrf.mxu1 }
 0x910   :  { %v601_v16 = vadd.f32 %v597_v15, %v203_v14 }
 0x911   :  { %v1275_v17 = vpop.f32.mrf.mxu1 }
 0x912   :  { %1356 = vtanh.f32 %v601_v16  ;;  %v1181_v19 = vmul.f32 -1.442695, %v601_v16 }
 0x914   :  { %1358 = vpow2.f32 %v1181_v19 }
 0x91f   :  { %v1357_v18 = vpop.eup %1356 }
 0x920   :  { %611 = vrot.lane.b32.xlu0 %v1357_v18, %s1524_s17 }
 0x921   :  { %v1359_v20 = vpop.eup %1358 }
 0x922   :  { %v605_v21 = vadd.f32 1.0, %v1359_v20 }
 0x924   :  { %1360 = vrcp.f32 %v605_v21 }
 0x931   :  { %v1361_v22 = vpop.eup %1360 }
 0x932   :  { %v609_v25 = vmul.f32 %v1361_v22, %v519_v3 }
 0x992   :  { %v612_v23 = vpop.permute.xlu0 %611 }
 0x993   :  { %v614_v24 = vmul.f32 %v1361_v22, %v612_v23 }
 0x995   :  { %616 = vrot.lane.b32.xlu1 %v614_v24, %s1525_s2 }
 0xa07   :  { %v617_v26 = vpop.permute.xlu1 %616 }
 0xa08   :  { %v619_v27 = vadd.f32 %v617_v26, %v609_v25 }
 0xa0a   :  { %1362 = vtanh.f32 %v619_v27 }
 0xa17   :  { %v1363_v30 = vpop.eup %1362 }
 0xa18   :  { %622 = vrot.lane.b32.xlu0 %v1363_v30, %s1525_s2 }
 0xa8a   :  { %v623_v31 = vpop.permute.xlu0 %622 }
 0xa8b   :  { %v625_v32 = vmul.f32 %v1361_v22, %v623_v31 }
 0xa8d   :  { %627 = vrot.lane.b32.xlu1 %v625_v32, %s1526_s18 }
 0xaff   :  { %v628_v33 = vpop.permute.xlu1 %627 }
 0xb00   :  { %1281 = vmatmul.mubr.msk.f32.vlgmr.msra.gmra.mxu0 %vm96_vm0, %v628_v33 }
 0xb01   :  { %1291 = vmatpush3.msra.mxu0 %v1590_v6  ;;  %1294 = vmatprep.mubr.msk.f32.mxu0 %vm1523_vm1, %v1522_v7 }
 0xb02   :  { %1292 = vmatprep.subr.mxu0 %v1522_v7 }
 0xb03   :  { %1293 = vmatpush3.msra.mxu0 %v1595_v8 }
 0xb04   :  { %1304 = vmatprep.subr.mxu0 %v1522_v7 }
 0xbc0   :  { %v697_v37 = vpop.f32.mrf.mxu0 }
 0xbc1   :  { %v701_v38 = vadd.f32 %v697_v37, %v208_v36  ;;  %v1190_v36 = vmul.f32 -1.442695, %v223_v29 }
 0xbc2   :  { %v1282_v39 = vpop.f32.mrf.mxu0 }
 0xbc3   :  { %1364 = vtanh.f32 %v701_v38  ;;  %v1183_v41 = vmul.f32 -1.442695, %v701_v38 }
 0xbc5   :  { %1366 = vpow2.f32 %v1183_v41 }
 0xbd0   :  { %v1365_v40 = vpop.eup %1364 }
 0xbd1   :  { %711 = vrot.lane.b32.xlu0 %v1365_v40, %s1524_s17 }
 0xbd2   :  { %v1367_v42 = vpop.eup %1366 }
 0xbd3   :  { %v705_v43 = vadd.f32 1.0, %v1367_v42 }
 0xbd5   :  { %1368 = vrcp.f32 %v705_v43 }
 0xbe2   :  { %v1369_v44 = vpop.eup %1368 }
 0xbe3   :  { %v709_v47 = vmul.f32 %v1369_v44, %v619_v27 }
 0xc43   :  { %v712_v45 = vpop.permute.xlu0 %711 }
 0xc44   :  { %v714_v46 = vmul.f32 %v1369_v44, %v712_v45 }
 0xc46   :  { %716 = vrot.lane.b32.xlu1 %v714_v46, %s1525_s2 }
 0xcb8   :  { %v717_v48 = vpop.permute.xlu1 %716 }
 0xcb9   :  { %v719_v49 = vadd.f32 %v717_v48, %v709_v47 }
 0xcbb   :  { %1370 = vtanh.f32 %v719_v49 }
 0xcc8   :  { %v1371_v50 = vpop.eup %1370 }
 0xcc9   :  { %722 = vrot.lane.b32.xlu0 %v1371_v50, %s1525_s2  ;;  %v1055_v50 = vld [vmem:[#allocation8 + $0x10] sm:$0xff] }
 0xd3b   :  { %v723_v51 = vpop.permute.xlu0 %722 }
 0xd3c   :  { %v725_v52 = vmul.f32 %v1369_v44, %v723_v51  ;;  %v1054_v51 = vld [vmem:[#allocation8 + $0x8] sm:$0xff] }
 0xd3e   :  { %727 = vrot.lane.b32.xlu1 %v725_v52, %s1526_s18 }
 0xdb0   :  { %v728_v53 = vpop.permute.xlu1 %727 }
 0xdb1   :  { %1288 = vmatmul.mubr.msk.f32.vlgmr.msra.gmra.mxu1 %vm96_vm0, %v728_v53 }
 0xdb2   :  { %1298 = vmatpush3.msra.mxu1 %v1590_v6  ;;  %1301 = vmatprep.mubr.msk.f32.mxu1 %vm1523_vm1, %v1522_v7 }
 0xdb3   :  { %1299 = vmatprep.subr.mxu1 %v1522_v7 }
 0xdb4   :  { %1300 = vmatpush3.msra.mxu1 %v1595_v8 }
 0xe71   :  { %v797_v55 = vpop.f32.mrf.mxu1 }
 0xe72   :  { %v801_v56 = vadd.f32 %v797_v55, %v213_v54  ;;  %v1053_v55 = vld [vmem:[#allocation8] sm:$0xff] }
 0xe73   :  { %v1289_v57 = vpop.f32.mrf.mxu1 }
 0xe74   :  { %1372 = vtanh.f32 %v801_v56  ;;  %v1185_v59 = vmul.f32 -1.442695, %v801_v56 }
 0xe76   :  { %1374 = vpow2.f32 %v1185_v59 }
 0xe81   :  { %v1373_v58 = vpop.eup %1372 }
 0xe82   :  { %811 = vrot.lane.b32.xlu0 %v1373_v58, %s1524_s17 }
 0xe83   :  { %v1375_v60 = vpop.eup %1374 }
 0xe84   :  { %v805_v6 = vadd.f32 1.0, %v1375_v60 }
 0xe86   :  { %1376 = vrcp.f32 %v805_v6 }
 0xe93   :  { %v1377_v61 = vpop.eup %1376 }
 0xe94   :  { %v809_v8 = vmul.f32 %v1377_v61, %v719_v49  ;;  %v1056_v49 = vld [vmem:[#allocation8 + $0x18] sm:$0xff] }
 0xef4   :  { %v812_v62 = vpop.permute.xlu0 %811 }
 0xef5   :  { %v814_v63 = vmul.f32 %v1377_v61, %v812_v62 }
 0xef7   :  { %816 = vrot.lane.b32.xlu1 %v814_v63, %s1525_s2 }
 0xf69   :  { %v817_v0 = vpop.permute.xlu1 %816 }
 0xf6a   :  { %v819_v1 = vadd.f32 %v817_v0, %v809_v8 }
 0xf6c   :  { %1378 = vtanh.f32 %v819_v1 }
 0xf79   :  { %v1379_v2 = vpop.eup %1378 }
 0xf7a   :  { %822 = vrot.lane.b32.xlu0 %v1379_v2, %s1525_s2 }
 0xfec   :  { %v823_v3 = vpop.permute.xlu0 %822 }
 0xfed   :  { %v825_v4 = vmul.f32 %v1377_v61, %v823_v3 }
 0xfef   :  { %827 = vrot.lane.b32.xlu1 %v825_v4, %s1526_s18 }
0x1061   :  { %v828_v5 = vpop.permute.xlu1 %827 }
0x1062   :  { %1295 = vmatmul.mubr.msk.f32.vlgmr.msra.gmra.mxu0 %vm96_vm0, %v828_v5 }
0x1063   :  { %1312 = vmatprep.mubr.msk.f32.mxu0 %vm1523_vm1, %v1522_v7  ;;  %1305 = vmatpush3.msra.mxu0 %v1056_v49 }
0x1064   :  { %1306 = vmatprep.subr.mxu0 %v1522_v7 }
0x1065   :  { %1307 = vmatpush3.msra.mxu0 %v1055_v50 }
0x1066   :  { %1308 = vmatprep.subr.mxu0 %v1522_v7 }
0x1067   :  { %1309 = vmatpush3.msra.mxu0 %v1054_v51 }
0x1068   :  { %1310 = vmatprep.subr.mxu0 %v1522_v7  ;;  %v1191_v7 = vld [vmem:[%s1727_s5] ss:$0 sm:$0xff]  ;;  %s1488_s5 = scalar_lea.vmem %s1156_s23, 128 }
0x1069   :  { %1311 = vmatpush3.msra.mxu0 %v1053_v55  ;;  %p1489_p6 = scmp.ne.s32.totalorder %s1156_s23, %s1488_s5  ;;  %p1494_p8 = scmp.lt.s32.totalorder %s1488_s5, %s1488_s5 }
0x106b   :  { %p1495_p9 = por %p1494_p8, %p1493_p7 }
0x106d   :  { %p1496_p10 = pnand %p1495_p9, %p1489_p6 }
0x1122   :  { %v897_v12 = vpop.f32.mrf.mxu0 }
0x1123   :  { %v901_v14 = vadd.f32 %v897_v12, %v218_v9 }
0x1124   :  { %v1296_v15 = vpop.f32.mrf.mxu0 }
0x1125   :  { %1380 = vtanh.f32 %v901_v14  ;;  %v1187_v17 = vmul.f32 -1.442695, %v901_v14 }
0x1127   :  { %1382 = vpow2.f32 %v1187_v17 }
0x1132   :  { %v1381_v16 = vpop.eup %1380 }
0x1133   :  { %911 = vrot.lane.b32.xlu0 %v1381_v16, %s1524_s17 }
0x1134   :  { %v1383_v18 = vpop.eup %1382 }
0x1135   :  { %v905_v19 = vadd.f32 1.0, %v1383_v18 }
0x1137   :  { %1384 = vrcp.f32 %v905_v19 }
0x1144   :  { %v1385_v20 = vpop.eup %1384 }
0x1145   :  { %v909_v23 = vmul.f32 %v1385_v20, %v819_v1 }
0x11a5   :  { %v912_v21 = vpop.permute.xlu0 %911 }
0x11a6   :  { %v914_v22 = vmul.f32 %v1385_v20, %v912_v21 }
0x11a8   :  { %916 = vrot.lane.b32.xlu1 %v914_v22, %s1525_s2 }
0x121a   :  { %v917_v24 = vpop.permute.xlu1 %916 }
0x121b   :  { %v919_v13 = vadd.f32 %v917_v24, %v909_v23 }
0x121d   :  { %1386 = vtanh.f32 %v919_v13 }
0x122a   :  { %v1387_v25 = vpop.eup %1386 }
0x122b   :  { %922 = vrot.lane.b32.xlu0 %v1387_v25, %s1525_s2 }
0x129d   :  { %v923_v26 = vpop.permute.xlu0 %922 }
0x129e   :  { %v925_v27 = vmul.f32 %v1385_v20, %v923_v26 }
0x12a0   :  { %927 = vrot.lane.b32.xlu1 %v925_v27, %s1526_s18 }
0x1312   :  { %v928_v28 = vpop.permute.xlu1 %927 }
0x1313   :  { %1302 = vmatmul.mubr.msk.f32.vlgmr.msra.gmra.mxu1 %vm96_vm0, %v928_v28 }
0x13d3   :  { %v997_v30 = vpop.f32.mrf.mxu1 }
0x13d4   :  { %v1001_v31 = vadd.f32 %v997_v30, %v223_v29 }
0x13d5   :  { %v1303_v32 = vpop.f32.mrf.mxu1 }
0x13d6   :  { %1388 = vtanh.f32 %v1001_v31  ;;  %v1189_v35 = vmul.f32 -1.442695, %v1001_v31 }
0x13d7   :  { %1390 = vtanh.f32 %v223_v29 }
0x13d8   :  { %1392 = vpow2.f32 %v1189_v35 }
0x13d9   :  { %1394 = vpow2.f32 %v1190_v36 }
0x13e3   :  { %v1389_v33 = vpop.eup %1388 }
0x13e4   :  { %1011 = vrot.lane.b32.xlu0 %v1389_v33, %s1524_s17  ;;  %v1391_v34 = vpop.eup %1390 }
0x13e5   :  { %v1393_v37 = vpop.eup %1392 }
0x13e6   :  { %v1005_v38 = vadd.f32 1.0, %v1393_v37  ;;  %v1395_v39 = vpop.eup %1394 }
0x13e7   :  { %v1029_v40 = vadd.f32 1.0, %v1395_v39 }
0x13e8   :  { %1034 = vrot.lane.b32.xlu0 %v1391_v34, %s1526_s18  ;;  %1396 = vrcp.f32 %v1005_v38 }
0x13e9   :  { %1398 = vrcp.f32 %v1029_v40 }
0x13f5   :  { %v1397_v10 = vpop.eup %1396 }
0x13f6   :  { %v1399_v42 = vpop.eup %1398  ;;  %v1009_v46 = vmul.f32 %v1397_v10, %v919_v13 }
0x1456   :  { %v1012_v11 = vpop.permute.xlu0 %1011 }
0x1457   :  { %v1014_v41 = vmul.f32 %v1397_v10, %v1012_v11 }
0x1459   :  { %1016 = vrot.lane.b32.xlu1 %v1014_v41, %s1525_s2 }
0x145a   :  { %v1035_v43 = vpop.permute.xlu0 %1034 }
0x145b   :  { %v1037_v44 = vmul.f32 %v1399_v42, %v1035_v43 }
0x145d   :  { %1400 = vtanh.f32 %v1037_v44 }
0x146a   :  { %v1401_v45 = vpop.eup %1400 }
0x146b   :  { %1040 = vrot.lane.b32.xlu0 %v1401_v45, %s1525_s2 }
0x14cb   :  { %v1017_v47 = vpop.permute.xlu1 %1016 }
0x14cc   :  { %v1019_v48 = vadd.f32 %v1017_v47, %v1009_v46 }
0x14ce   :  { %1402 = vtanh.f32 %v1019_v48 }
0x14db   :  { %v1403_v52 = vpop.eup %1402 }
0x14dc   :  { %1022 = vrot.lane.b32.xlu1 %v1403_v52, %s1525_s2 }
0x14dd   :  { %v1041_v53 = vpop.permute.xlu0 %1040 }
0x14de   :  { %v1043_v54 = vmul.f32 %v1399_v42, %v1041_v53 }
0x14e0   :  { %1049 = vrot.lane.b32.xlu0 %v1043_v54, %s1527_s19 }
0x154e   :  { %v1023_v56 = vpop.permute.xlu1 %1022 }
0x154f   :  { %v1025_v57 = vmul.f32 %v1397_v10, %v1023_v56 }
0x1551   :  { %1045 = vrot.lane.b32.xlu1 %v1025_v57, %s1526_s18 }
0x1552   :  { %v1050_v58 = vpop.permute.xlu0 %1049 }
0x15c3   :  { %v1046_v59 = vpop.permute.xlu1 %1045 }
0x15c4   :  { %v1052_v60 = vsel %vm96_vm0, %v1046_v59, %v1050_v58 }
0x15c5   :  { %1313 = vmatmul.mubr.msk.f32.vlgmr.msra.gmra.mxu0 %vm1064_vm2, %v1052_v60 }
0x1685   :  { %v1134_v6 = vpop.f32.mrf.mxu0 }
0x1686   :  { %v1135_v61 = vadd.f32 %v1191_v7, %v1134_v6 }
0x1687   :  { %v1314_v62 = vpop.f32.mrf.mxu0 }
0x1688   :  { %1138 = vmax.xlane.f32.xlu1 %v1135_v61 }
0x1711   :  { %v1139_v63 = vpop.xlane.xlu1 %1138 }
0x1712   :  { %v1140_v8 = vsub.f32 %v1135_v61, %v1139_v63 }
0x1714   :  { %v1141_v0 = vmul.f32 1.442695, %v1140_v8 }
0x1716   :  { %1404 = vpow2.f32 %v1141_v0 }
0x1723   :  { %v1405_v1 = vpop.eup %1404 }
0x1724   :  { %1143 = vadd.xlane.f32.xlu0 %v1405_v1 }
0x17ad   :  { %v1144_v2 = vpop.xlane.xlu0 %1143 }
0x17ae   :  { %1406 = vlog2.f32 %v1144_v2 }
0x17bb   :  { %v1407_v3 = vpop.eup %1406 }
0x17bc   :  { %v1146_v4 = vmul.f32 0.6931472, %v1407_v3 }
0x17be   :  { %v1147_v5 = vsub.f32 %v1140_v8, %v1146_v4 }
0x17c0   :  { %1148 = vst [vmem:[#allocation10] sm:$0xff] %v1147_v5 }
0x17c1   :  { %1499 = shalt.err (!%p1496_p10)
}
0x17c2   :  { %1158 = dma.vmem_to_hbm [thread:$0]  %s1156_s23, 128, %s1728_s6, [#allocation4]  }
0x17c3   :  { %1514 = dma.done.wait [#allocation4], 128  }
0x17c4   :  { %1515 = vsyncadd [#allocation4], 4294967168 }
0x17c5   :  { %1162 = vsyncpa [#allocation3], 1 }
0x17c6   :  { %1163 = vsyncpa [#allocation6], 1 }
0x17c7   :  { %1164 = vsyncpa [#allocation9], 1 }
0x17c8   :  { %1165 = vsyncpa [#allocation4], 1 }

</bundles_post_ra>
